<compile_context>
chip_gen: v7x
topology: tpu7x:2x2x1
jax: 0.10.0
libtpu: 0.0.40
codegen_flags: <defaults>
</compile_context>

<pallas_src>
import functools

import jax
import jax.numpy as jnp
from jax.experimental import pallas as pl
from jax.experimental.pallas import tpu as pltpu


# --------------------------- Pallas kernels ---------------------------------

def _shift_down(x, shift, fill):
    """y[i] = x[i - shift] for i >= shift, `fill` below.

    Pure static slice + concat: runs off the MXU and needs no NxN shift matrix.
    """
    pad = jnp.full((shift,) + x.shape[1:], fill, x.dtype)
    return jnp.concatenate([pad, x[: x.shape[0] - shift]], axis=0)


def _chunker_kernel(tokens_ref, wqk_ref, sk_ref,
                    down_ref, probs_ref, lens_ref,
                    *, heads, dqk, boundary_threshold, pos_tile):
    """One batch row per grid step; all heads processed inside the step.

    Refs per grid step:
      tokens_ref : (1, N, D)       tokens for batch b
      wqk_ref    : (D, 2*H*Dk)     fused [all-head Wq | all-head Wk]
      sk_ref     : (H, Dk)         learned start keys
      down_ref   : (H, 1, N, D)    smoothed downsampled tokens (chunk axis padded to N)
      probs_ref  : (H, 1, N, 1)    boundary probability per position
      lens_ref   : (H, 1, 1, N)    chunk lengths, lane-dense (0 marks padded slots)
    """
    _, N, D = tokens_ref.shape
    x = tokens_ref[0]                                             # (N, D)

    # One fused MXU matmul for every head's queries and keys.  Per-dot HIGHEST
    # keeps f32 parity with the PyTorch Linear for the similarity scores; the
    # structural 0/1 matmul below runs at default (bf16-pass) precision.
    qk = jnp.dot(x, wqk_ref[...],
                 precision=jax.lax.Precision.HIGHEST,
                 preferred_element_type=jnp.float32)              # (N, 2*H*Dk)

    pos_col = jax.lax.broadcasted_iota(jnp.int32, (N, 1), 0)      # position ids (sublanes)
    chunk_lane = jax.lax.broadcasted_iota(jnp.int32, (pos_tile, N), 1)  # chunk ids (lanes)
    contract_pos = (((0,), (0,)), ((), ()))                       # contract position axis

    for h in range(heads):
        q = qk[:, h * dqk:(h + 1) * dqk]                          # (N, Dk)
        k = qk[:, (heads + h) * dqk:(heads + h + 1) * dqk]        # (N, Dk)
        sk = sk_ref[h:h + 1, :]                                   # (1, Dk)

        # key used at position t is k[t-1]; the learned start key at t == 0.
        k_shift = jnp.concatenate([sk, k[:N - 1, :]], axis=0)     # (N, Dk)

        # cosine similarity; each norm clamped at eps individually, matching
        # torch.cosine_similarity.
        eps = 1e-8
        w12 = jnp.sum(q * k_shift, axis=1, keepdims=True)
        nq = jnp.maximum(jnp.sqrt(jnp.sum(q * q, axis=1, keepdims=True)), eps)
        nk = jnp.maximum(jnp.sqrt(jnp.sum(k_shift * k_shift, axis=1, keepdims=True)), eps)
        probs = (1.0 - w12 / (nq * nk)) * 0.5                     # (N, 1)

        boundary = jnp.logical_or(probs > boundary_threshold, pos_col == 0)
        bnd_f = boundary.astype(jnp.float32)

        # chunk (segment) id per position = inclusive prefix-sum of boundary
        # indicators minus one.  log2(N)-step shift+add in int32 (always exact);
        # replaces the NxN lower-triangular matmul.
        seg = boundary.astype(jnp.int32)
        stride = 1
        while stride < N:
            seg = seg + _shift_down(seg, stride, 0)
            stride *= 2
        seg = seg - 1                                             # (N, 1), values in [0, N)

        # Gather the boundary rows into chunk slots with a position-tiled
        # one-hot matmul (live VMEM O(pos_tile * N), not O(N^2)).  The matmul
        # runs at default matmul precision (single bf16 MXU pass on v5e/v6e).
        # Chunk lengths stay exact via an f32 sublane reduction off the MXU and
        # come out lane-dense (1, N).
        vals = x * (probs * bnd_f)                                # (N, D) zero off-boundary
        bp_src = probs * bnd_f                                    # (N, 1)
        down_w = jnp.zeros((N, D), jnp.float32)
        bprobs = jnp.zeros((N, 1), jnp.float32)
        lens = jnp.zeros((1, N), jnp.float32)
        for t0 in range(0, N, pos_tile):
            tp = min(pos_tile, N - t0)
            is_member = seg[t0:t0 + tp, :] == chunk_lane[:tp, :]  # (tp, N_chunks)
            onehot = is_member.astype(jnp.float32)
            down_w = down_w + jax.lax.dot_general(
                onehot, vals[t0:t0 + tp, :], contract_pos,
                preferred_element_type=jnp.float32)
            bprobs = bprobs + jax.lax.dot_general(
                onehot, bp_src[t0:t0 + tp, :], contract_pos,
                preferred_element_type=jnp.float32)
            lens = lens + jnp.sum(onehot, axis=0, keepdims=True)

        # Smoothing recurrence y[c] = (1 - bprob[c]) * y[c-1] + down_w[c]
        # (y[-1] = 0) as a log2(N)-depth Hillis-Steele scan over the affine
        # (gate, value) monoid: full-width vregs, no serial N-step chain, no
        # N-way concatenate.
        gate = 1.0 - bprobs                                       # (N, 1)
        acc = down_w                                              # (N, D)
        stride = 1
        while stride < N:
            acc = gate * _shift_down(acc, stride, 0.0) + acc
            gate = gate * _shift_down(gate, stride, 1.0)
            stride *= 2

        down_ref[h, 0, :, :] = acc
        probs_ref[h, 0, :, :] = probs
        lens_ref[h, 0, :, :] = lens


def _dense_kernel(x_ref, w_ref, b_ref, o_ref):
    o_ref[...] = (jnp.dot(x_ref[...], w_ref[...],
                          preferred_element_type=jnp.float32) + b_ref[...])


def _dense(x, w, b, *, tile_m=128):
    """Row-tiled dense layer: (M, K) @ (K, Dout) + (1, Dout)."""
    m, kdim = x.shape
    dout = w.shape[1]
    tile_m = min(tile_m, m)
    return pl.pallas_call(
        _dense_kernel,
        out_shape=jax.ShapeDtypeStruct((m, dout), jnp.float32),
        grid_spec=pltpu.PrefetchScalarGridSpec(
            num_scalar_prefetch=0,
            grid=(pl.cdiv(m, tile_m),),
            in_specs=[pl.BlockSpec((tile_m, kdim), lambda i: (i, 0)),
                      pl.BlockSpec((kdim, dout), lambda i: (0, 0)),
                      pl.BlockSpec((1, dout), lambda i: (0, 0))],
            out_specs=pl.BlockSpec((tile_m, dout), lambda i: (i, 0))),
        compiler_params=pltpu.CompilerParams(
            dimension_semantics=("parallel",)),
    )(x, w, b)


# ----------------------------- Wrapper ---------------------------------------

def multi_head_dynamic_chunker_forward(tokens, params, *,
                                       boundary_threshold=0.5,
                                       target_avg_token_length=6.0,
                                       ratio_loss_weight=0.03,
                                       pos_tile=256):
    """Forward pass of MultiHeadDynamicSequenceChunker (training-mode forward values).

    Returns ((downsampled, upsample_fn, weighted_aux_loss), intermediates_dict).
    downsampled: (H*B, N, D) with the chunk axis padded to N.
    """
    B, N, D = tokens.shape
    wq, wk, start_key = params["wq"], params["wk"], params["start_key"]
    H, _, Dk = wq.shape
    pos_tile = max(1, min(pos_tile, N))

    # Fused projection weight [all-head Wq | all-head Wk] -> (D, 2*H*Dk) so the
    # kernel does a single well-shaped MXU matmul per batch row.
    wq_flat = jnp.transpose(wq, (1, 0, 2)).reshape(D, H * Dk)
    wk_flat = jnp.transpose(wk, (1, 0, 2)).reshape(D, H * Dk)
    wqk = jnp.concatenate([wq_flat, wk_flat], axis=1)

    kernel = functools.partial(_chunker_kernel, heads=H, dqk=Dk,
                               boundary_threshold=boundary_threshold,
                               pos_tile=pos_tile)

    out_shapes = (
        jax.ShapeDtypeStruct((H, B, N, D), jnp.float32),   # smoothed downsampled
        jax.ShapeDtypeStruct((H, B, N, 1), jnp.float32),   # boundary probabilities
        jax.ShapeDtypeStruct((H, B, 1, N), jnp.float32),   # chunk lens (lane-dense)
    )
    grid_spec = pltpu.PrefetchScalarGridSpec(
        num_scalar_prefetch=0,
        # Batch-only grid: tokens are DMA'd once per row and all heads are fused
        # into one step (amortizes per-step overhead); 'parallel' lets v7x shard
        # rows across its two TensorCores.
        grid=(B,),
        in_specs=[
            pl.BlockSpec((1, N, D), lambda b: (b, 0, 0)),          # tokens
            pl.BlockSpec((D, 2 * H * Dk), lambda b: (0, 0)),       # fused Wq|Wk
            pl.BlockSpec((H, Dk), lambda b: (0, 0)),               # start keys
        ],
        out_specs=[
            pl.BlockSpec((H, 1, N, D), lambda b: (0, b, 0, 0)),
            pl.BlockSpec((H, 1, N, 1), lambda b: (0, b, 0, 0)),
            pl.BlockSpec((H, 1, 1, N), lambda b: (0, b, 0, 0)),    # lane-dense lens
        ],
    )
    down4, probs4, lens4 = pl.pallas_call(
        kernel,
        out_shape=out_shapes,
        grid_spec=grid_spec,
        compiler_params=pltpu.CompilerParams(
            dimension_semantics=("parallel",),
            # No N^2 intermediates remain; per-step working set is
            # O(N*D + pos_tile*N), so 32 MiB leaves headroom even on v7x (64 MiB).
            vmem_limit_bytes=32 * 1024 * 1024),
    )(tokens, wqk, start_key)

    HB = H * B
    downsampled = down4.reshape(HB, N, D)                  # '(h b)' merge
    probs = probs4.reshape(HB, N)
    chunk_lens = lens4.reshape(HB, N).astype(jnp.int32)    # exact integers in f32
    mask = chunk_lens > 0
    # boundary mask is a cheap elementwise recompute from the stored probs (bit
    # identical to the in-kernel decision) -- one fewer narrow store.
    boundary_mask = jnp.logical_or(probs > boundary_threshold,
                                   jnp.arange(N)[None, :] == 0)

    # forward value of straight_through(confidence, 1.0) is all ones
    upsampler_output_scale = jnp.ones((HB, N), jnp.float32)

    # auxiliary ratio loss (forward values; straight-through keeps the hard F)
    F = boundary_mask.astype(jnp.float32).mean(axis=-1)
    G = probs.mean(axis=-1)
    Nt = target_avg_token_length
    aux_ratio = (Nt / (Nt - 1.0)) * ((Nt - 1.0) * F * G + (1.0 - F) * (1.0 - G))
    aux_loss = aux_ratio.mean()
    weighted_aux_loss = aux_loss * ratio_loss_weight

    intermediates = dict(mask=mask, probs=probs, chunk_lens=chunk_lens,
                         boundary_mask=boundary_mask, residual=tokens,
                         upsampler_output_scale=upsampler_output_scale,
                         aux_ratio_loss=aux_loss)

    def upsample(downsampled_in, apply_scale=True):
        # repeat_interleave(downsampled, chunk_lens) == gather at per-position chunk id
        seg_id = jnp.cumsum(boundary_mask.astype(jnp.int32), axis=-1) - 1   # (HB, N)
        ups = jnp.take_along_axis(downsampled_in, seg_id[..., None], axis=1)
        if apply_scale:
            ups = ups * upsampler_output_scale[..., None]   # forward value: ones
        # combine heads: '(h b) n d -> b n (h d)' followed by Linear(dim*heads, dim)
        ups = ups.reshape(H, B, N, D).transpose(1, 2, 0, 3).reshape(B * N, H * D)
        out = _dense(ups, params["combine_w"], params["combine_b"]).reshape(B, N, D)
        # handle_residual_proj defaults to False; frac_gradient is identity in forward
        return out

    return (downsampled, upsample, weighted_aux_loss), intermediates


# ------------------------------- main -----------------------------------------

if __name__ == "__main__":
    B, N, D = 2, 8, 32          # batch, seq, dim
    H, Dk = 2, 32               # heads, dim_queries_keys (defaults to dim)

    key = jax.random.PRNGKey(0)
    k1, k2, k3, k4, k5, k6 = jax.random.split(key, 6)
    tokens = jax.random.normal(k1, (B, N, D), jnp.float32)
    # to_queries_keys Linear(dim, heads*dqk*2, bias=False), pre-split into
    # per-head (D, Dk) query / key projections.
    params = dict(
        wq=jax.random.normal(k2, (H, D, Dk), jnp.float32) * 0.02,
        wk=jax.random.normal(k3, (H, D, Dk), jnp.float32) * 0.02,
        start_key=jax.random.normal(k4, (H, Dk), jnp.float32) * 0.01,
        # combine_heads Linear(dim*heads, dim): stored as (H*D, D) used as x @ W
        combine_w=jax.random.normal(k5, (H * D, D), jnp.float32) * 0.02,
        combine_b=jax.random.normal(k6, (1, D), jnp.float32) * 0.01,
    )

    (downsampled, upsample_fn, weighted_aux), inter = \
        multi_head_dynamic_chunker_forward(tokens, params)
    jax.block_until_ready((downsampled, weighted_aux))

    upsampled = upsample_fn(downsampled)
    jax.block_until_ready(upsampled)

    # ------------- lightweight correctness checks (pure JAX reference) -------------
    # 1) boundary probabilities vs an exact-f32 recompute.
    q_r = jnp.einsum("bnd,hdk->hbnk", tokens, params["wq"],
                     precision="highest").reshape(H * B, N, Dk)
    k_r = jnp.einsum("bnd,hdk->hbnk", tokens, params["wk"],
                     precision="highest").reshape(H * B, N, Dk)
    sk_r = jnp.broadcast_to(params["start_key"][:, None, None, :],
                            (H, B, 1, Dk)).reshape(H * B, 1, Dk)
    keys_cat = jnp.concatenate([sk_r, k_r], axis=1)[:, :-1]
    w12 = jnp.sum(q_r * keys_cat, -1)
    nq = jnp.maximum(jnp.sqrt(jnp.sum(q_r * q_r, -1)), 1e-8)
    nk = jnp.maximum(jnp.sqrt(jnp.sum(keys_cat * keys_cat, -1)), 1e-8)
    probs_ref = (1.0 - w12 / (nq * nk)) * 0.5
    assert bool(jnp.allclose(probs_ref, inter["probs"], atol=1e-4, rtol=1e-4))

    # 2) smoothed downsampled tokens recomputed (exact f32 reference) from the
    #    kernel's own boundary decisions.  Tolerance accommodates the default
    #    (reduced, bf16-pass) MXU precision of the in-kernel structural gather;
    #    a structural/indexing bug would produce O(1) differences.
    bnd_f = inter["boundary_mask"].astype(jnp.float32)
    probs_k = inter["probs"]
    seg_r = jnp.cumsum(bnd_f, axis=-1) - 1.0
    onehot = (seg_r[:, :, None] ==
              jnp.arange(N, dtype=jnp.float32)[None, None, :]).astype(jnp.float32)
    scat_b = onehot * bnd_f[:, :, None]
    tokens_rep = jnp.broadcast_to(tokens[None], (H, B, N, D)).reshape(H * B, N, D)
    down_w_r = jnp.einsum("btc,btd->bcd", scat_b,
                          tokens_rep * probs_k[..., None], precision="highest")
    gates_r = 1.0 - jnp.einsum("btc,bt->bc", scat_b, probs_k, precision="highest")
    ys = [down_w_r[:, 0]]
    for c in range(1, N):
        ys.append(gates_r[:, c][:, None] * ys[-1] + down_w_r[:, c])
    smoothed_ref = jnp.stack(ys, axis=1)
    assert bool(jnp.allclose(smoothed_ref, downsampled, atol=5e-2, rtol=2e-2))

    # 3) chunk lengths are exact and structurally consistent.
    lens_ref = onehot.sum(axis=1).astype(jnp.int32)
    assert bool(jnp.all(lens_ref == inter["chunk_lens"]))
    assert bool(jnp.all(inter["chunk_lens"].sum(-1) == N))
    assert upsampled.shape == (B, N, D)
    assert bool(jnp.all(jnp.isfinite(upsampled)))
    assert bool(jnp.isfinite(weighted_aux))

    print("KERNEL_OK")
</pallas_src>

<mosaic_0001>
module attributes {stable_mosaic.version = 11 : i64} {
  func.func @_chunker_kernel(%arg0: i32, %arg1: memref<1x8x32xf32, #tpu.memory_space<vmem>>, %arg2: memref<32x128xf32, #tpu.memory_space<vmem>>, %arg3: memref<2x32xf32, #tpu.memory_space<vmem>>, %arg4: memref<2x1x8x32xf32, #tpu.memory_space<vmem>>, %arg5: memref<2x1x8x1xf32, #tpu.memory_space<vmem>>, %arg6: memref<2x1x1x8xf32, #tpu.memory_space<vmem>>) attributes {dimension_semantics = [#tpu.dimension_semantics<parallel>], iteration_bounds = array<i64: 2>, scalar_prefetch = 0 : i64, scratch_operands = 0 : i64, tpu.core_type = #tpu.core_type<tc>, window_params = [{transform_indices = @transform_0, window_bounds = array<i64: 1, 8, 32>}, {pipeline_mode = #tpu.pipeline_mode<synchronous>, transform_indices = @transform_1, window_bounds = array<i64: 32, 128>}, {pipeline_mode = #tpu.pipeline_mode<synchronous>, transform_indices = @transform_2, window_bounds = array<i64: 2, 32>}, {transform_indices = @transform_3, window_bounds = array<i64: 2, 1, 8, 32>}, {transform_indices = @transform_4, window_bounds = array<i64: 2, 1, 8, 1>}, {transform_indices = @transform_5, window_bounds = array<i64: 2, 1, 1, 8>}]} {
    %c0 = arith.constant 0 : index
    %c0_0 = arith.constant 0 : index
    %c0_1 = arith.constant 0 : index
    %0 = vector.load %arg1[%c0, %c0_0, %c0_1] : memref<1x8x32xf32, #tpu.memory_space<vmem>>, vector<1x8x32xf32>
    %1 = vector.shape_cast %0 : vector<1x8x32xf32> to vector<8x32xf32>
    %c0_2 = arith.constant 0 : index
    %c0_3 = arith.constant 0 : index
    %2 = vector.load %arg2[%c0_2, %c0_3] : memref<32x128xf32, #tpu.memory_space<vmem>>, vector<32x128xf32>
    %cst = arith.constant dense<0.000000e+00> : vector<8x128xf32>
    %3 = tpu.matmul %1, %2, %cst {dimension_numbers = #tpu.dot_dimension_numbers<[1], [0], [0], [1], [0, 0, 1, 1], [], []>, precision = #tpu.contract_precision<fp32>} : vector<8x32xf32>, vector<32x128xf32>, vector<8x128xf32> -> vector<8x128xf32>
    %4 = tpu.iota {dimensions = array<i32: 0>} : vector<8x1xi32>
    %5 = tpu.iota {dimensions = array<i32: 1>} : vector<8x8xi32>
    %6 = vector.extract_strided_slice %3 {offsets = [0, 0], sizes = [8, 32], strides = [1, 1]} : vector<8x128xf32> to vector<8x32xf32>
    %7 = vector.extract_strided_slice %3 {offsets = [0, 64], sizes = [8, 32], strides = [1, 1]} : vector<8x128xf32> to vector<8x32xf32>
    %c0_4 = arith.constant 0 : index
    %c0_5 = arith.constant 0 : index
    %8 = vector.load %arg3[%c0_4, %c0_5] : memref<2x32xf32, #tpu.memory_space<vmem>>, vector<1x32xf32>
    %9 = vector.extract_strided_slice %7 {offsets = [0, 0], sizes = [7, 32], strides = [1, 1]} : vector<8x32xf32> to vector<7x32xf32>
    %10 = tpu.concatenate %8, %9 in 0 : vector<1x32xf32>, vector<7x32xf32> -> vector<8x32xf32>
    %11 = arith.mulf %6, %10 : vector<8x32xf32>
    %cst_6 = arith.constant dense<0.000000e+00> : vector<8xf32>
    %12 = vector.multi_reduction <add>, %11, %cst_6 [1] : vector<8x32xf32> to vector<8xf32>
    %13 = vector.shape_cast %12 : vector<8xf32> to vector<8x1xf32>
    %14 = arith.mulf %6, %6 : vector<8x32xf32>
    %cst_7 = arith.constant dense<0.000000e+00> : vector<8xf32>
    %15 = vector.multi_reduction <add>, %14, %cst_7 [1] : vector<8x32xf32> to vector<8xf32>
    %16 = vector.shape_cast %15 : vector<8xf32> to vector<8x1xf32>
    %17 = math.sqrt %16 : vector<8x1xf32>
    %cst_8 = arith.constant 9.99999993E-9 : f32
    %18 = vector.broadcast %cst_8 : f32 to vector<8x1xf32>
    %19 = arith.maximumf %17, %18 : vector<8x1xf32>
    %20 = arith.mulf %10, %10 : vector<8x32xf32>
    %cst_9 = arith.constant dense<0.000000e+00> : vector<8xf32>
    %21 = vector.multi_reduction <add>, %20, %cst_9 [1] : vector<8x32xf32> to vector<8xf32>
    %22 = vector.shape_cast %21 : vector<8xf32> to vector<8x1xf32>
    %23 = math.sqrt %22 : vector<8x1xf32>
    %cst_10 = arith.constant 9.99999993E-9 : f32
    %24 = vector.broadcast %cst_10 : f32 to vector<8x1xf32>
    %25 = arith.maximumf %23, %24 : vector<8x1xf32>
    %26 = arith.mulf %19, %25 : vector<8x1xf32>
    %27 = arith.divf %13, %26 : vector<8x1xf32>
    %cst_11 = arith.constant 1.000000e+00 : f32
    %28 = vector.broadcast %cst_11 : f32 to vector<8x1xf32>
    %29 = arith.subf %28, %27 : vector<8x1xf32>
    %cst_12 = arith.constant 5.000000e-01 : f32
    %30 = vector.broadcast %cst_12 : f32 to vector<8x1xf32>
    %31 = arith.mulf %29, %30 : vector<8x1xf32>
    %cst_13 = arith.constant 5.000000e-01 : f32
    %32 = vector.broadcast %cst_13 : f32 to vector<8x1xf32>
    %33 = arith.cmpf ogt, %31, %32 : vector<8x1xf32>
    %c0_i32 = arith.constant 0 : i32
    %34 = vector.broadcast %c0_i32 : i32 to vector<8x1xi32>
    %35 = arith.cmpi eq, %4, %34 : vector<8x1xi32>
    %36 = arith.ori %33, %35 : vector<8x1xi1>
    %37 = arith.extui %36 : vector<8x1xi1> to vector<8x1xi32>
    %38 = arith.sitofp %37 : vector<8x1xi32> to vector<8x1xf32>
    %39 = arith.extui %36 : vector<8x1xi1> to vector<8x1xi32>
    %c0_i32_14 = arith.constant 0 : i32
    %40 = vector.broadcast %c0_i32_14 : i32 to vector<1x1xi32>
    %41 = vector.extract_strided_slice %39 {offsets = [0, 0], sizes = [7, 1], strides = [1, 1]} : vector<8x1xi32> to vector<7x1xi32>
    %42 = tpu.concatenate %40, %41 in 0 : vector<1x1xi32>, vector<7x1xi32> -> vector<8x1xi32>
    %43 = arith.addi %39, %42 : vector<8x1xi32>
    %c0_i32_15 = arith.constant 0 : i32
    %44 = vector.broadcast %c0_i32_15 : i32 to vector<2x1xi32>
    %45 = vector.extract_strided_slice %43 {offsets = [0, 0], sizes = [6, 1], strides = [1, 1]} : vector<8x1xi32> to vector<6x1xi32>
    %46 = tpu.concatenate %44, %45 in 0 : vector<2x1xi32>, vector<6x1xi32> -> vector<8x1xi32>
    %47 = arith.addi %43, %46 : vector<8x1xi32>
    %c0_i32_16 = arith.constant 0 : i32
    %48 = vector.broadcast %c0_i32_16 : i32 to vector<4x1xi32>
    %49 = vector.extract_strided_slice %47 {offsets = [0, 0], sizes = [4, 1], strides = [1, 1]} : vector<8x1xi32> to vector<4x1xi32>
    %50 = tpu.concatenate %48, %49 in 0 : vector<4x1xi32>, vector<4x1xi32> -> vector<8x1xi32>
    %51 = arith.addi %47, %50 : vector<8x1xi32>
    %c1_i32 = arith.constant 1 : i32
    %52 = vector.broadcast %c1_i32 : i32 to vector<8x1xi32>
    %53 = arith.subi %51, %52 : vector<8x1xi32>
    %54 = arith.mulf %31, %38 : vector<8x1xf32>
    %55 = vector.broadcast %54 : vector<8x1xf32> to vector<8x32xf32>
    %56 = arith.mulf %1, %55 : vector<8x32xf32>
    %57 = arith.mulf %31, %38 : vector<8x1xf32>
    %cst_17 = arith.constant 0.000000e+00 : f32
    %58 = vector.broadcast %cst_17 : f32 to vector<8x32xf32>
    %cst_18 = arith.constant 0.000000e+00 : f32
    %59 = vector.broadcast %cst_18 : f32 to vector<8x1xf32>
    %cst_19 = arith.constant 0.000000e+00 : f32
    %60 = vector.broadcast %cst_19 : f32 to vector<1x8xf32>
    %61 = vector.broadcast %53 : vector<8x1xi32> to vector<8x8xi32>
    %62 = arith.cmpi eq, %61, %5 : vector<8x8xi32>
    %63 = arith.extui %62 : vector<8x8xi1> to vector<8x8xi32>
    %64 = arith.sitofp %63 : vector<8x8xi32> to vector<8x8xf32>
    %cst_20 = arith.constant dense<0.000000e+00> : vector<8x32xf32>
    %65 = tpu.matmul %64, %56, %cst_20 {dimension_numbers = #tpu.dot_dimension_numbers<[0], [0], [1], [1], [0, 1, 1, 1], [], []>} : vector<8x8xf32>, vector<8x32xf32>, vector<8x32xf32> -> vector<8x32xf32>
    %66 = arith.addf %58, %65 : vector<8x32xf32>
    %cst_21 = arith.constant dense<0.000000e+00> : vector<8x1xf32>
    %67 = tpu.matmul %64, %57, %cst_21 {dimension_numbers = #tpu.dot_dimension_numbers<[0], [0], [1], [1], [0, 1, 1, 1], [], []>} : vector<8x8xf32>, vector<8x1xf32>, vector<8x1xf32> -> vector<8x1xf32>
    %68 = arith.addf %59, %67 : vector<8x1xf32>
    %cst_22 = arith.constant dense<0.000000e+00> : vector<8xf32>
    %69 = vector.multi_reduction <add>, %64, %cst_22 [0] : vector<8x8xf32> to vector<8xf32>
    %70 = vector.shape_cast %69 : vector<8xf32> to vector<1x8xf32>
    %71 = arith.addf %60, %70 : vector<1x8xf32>
    %cst_23 = arith.constant 1.000000e+00 : f32
    %72 = vector.broadcast %cst_23 : f32 to vector<8x1xf32>
    %73 = arith.subf %72, %68 : vector<8x1xf32>
    %cst_24 = arith.constant 0.000000e+00 : f32
    %74 = vector.broadcast %cst_24 : f32 to vector<1x32xf32>
    %75 = vector.extract_strided_slice %66 {offsets = [0, 0], sizes = [7, 32], strides = [1, 1]} : vector<8x32xf32> to vector<7x32xf32>
    %76 = tpu.concatenate %74, %75 in 0 : vector<1x32xf32>, vector<7x32xf32> -> vector<8x32xf32>
    %77 = vector.broadcast %73 : vector<8x1xf32> to vector<8x32xf32>
    %78 = arith.mulf %77, %76 : vector<8x32xf32>
    %79 = arith.addf %78, %66 : vector<8x32xf32>
    %cst_25 = arith.constant 1.000000e+00 : f32
    %80 = vector.broadcast %cst_25 : f32 to vector<1x1xf32>
    %81 = vector.extract_strided_slice %73 {offsets = [0, 0], sizes = [7, 1], strides = [1, 1]} : vector<8x1xf32> to vector<7x1xf32>
    %82 = tpu.concatenate %80, %81 in 0 : vector<1x1xf32>, vector<7x1xf32> -> vector<8x1xf32>
    %83 = arith.mulf %73, %82 : vector<8x1xf32>
    %cst_26 = arith.constant 0.000000e+00 : f32
    %84 = vector.broadcast %cst_26 : f32 to vector<2x32xf32>
    %85 = vector.extract_strided_slice %79 {offsets = [0, 0], sizes = [6, 32], strides = [1, 1]} : vector<8x32xf32> to vector<6x32xf32>
    %86 = tpu.concatenate %84, %85 in 0 : vector<2x32xf32>, vector<6x32xf32> -> vector<8x32xf32>
    %87 = vector.broadcast %83 : vector<8x1xf32> to vector<8x32xf32>
    %88 = arith.mulf %87, %86 : vector<8x32xf32>
    %89 = arith.addf %88, %79 : vector<8x32xf32>
    %cst_27 = arith.constant 1.000000e+00 : f32
    %90 = vector.broadcast %cst_27 : f32 to vector<2x1xf32>
    %91 = vector.extract_strided_slice %83 {offsets = [0, 0], sizes = [6, 1], strides = [1, 1]} : vector<8x1xf32> to vector<6x1xf32>
    %92 = tpu.concatenate %90, %91 in 0 : vector<2x1xf32>, vector<6x1xf32> -> vector<8x1xf32>
    %93 = arith.mulf %83, %92 : vector<8x1xf32>
    %cst_28 = arith.constant 0.000000e+00 : f32
    %94 = vector.broadcast %cst_28 : f32 to vector<4x32xf32>
    %95 = vector.extract_strided_slice %89 {offsets = [0, 0], sizes = [4, 32], strides = [1, 1]} : vector<8x32xf32> to vector<4x32xf32>
    %96 = tpu.concatenate %94, %95 in 0 : vector<4x32xf32>, vector<4x32xf32> -> vector<8x32xf32>
    %97 = vector.broadcast %93 : vector<8x1xf32> to vector<8x32xf32>
    %98 = arith.mulf %97, %96 : vector<8x32xf32>
    %99 = arith.addf %98, %89 : vector<8x32xf32>
    %c0_29 = arith.constant 0 : index
    %c0_30 = arith.constant 0 : index
    %c0_31 = arith.constant 0 : index
    %c0_32 = arith.constant 0 : index
    %100 = vector.load %arg4[%c0_29, %c0_30, %c0_31, %c0_32] : memref<2x1x8x32xf32, #tpu.memory_space<vmem>>, vector<1x1x8x32xf32>
    %101 = vector.shape_cast %100 : vector<1x1x8x32xf32> to vector<8x32xf32>
    %102 = vector.shape_cast %99 : vector<8x32xf32> to vector<1x1x8x32xf32>
    tpu.vector_store %arg4[%c0_29, %c0_30, %c0_31, %c0_32], %102 {strides = array<i32>} : memref<2x1x8x32xf32, #tpu.memory_space<vmem>>, vector<1x1x8x32xf32>,
    %c0_33 = arith.constant 0 : index
    %c0_34 = arith.constant 0 : index
    %c0_35 = arith.constant 0 : index
    %c0_36 = arith.constant 0 : index
    %103 = vector.load %arg5[%c0_33, %c0_34, %c0_35, %c0_36] : memref<2x1x8x1xf32, #tpu.memory_space<vmem>>, vector<1x1x8x1xf32>
    %104 = vector.shape_cast %103 : vector<1x1x8x1xf32> to vector<8x1xf32>
    %105 = vector.shape_cast %31 : vector<8x1xf32> to vector<1x1x8x1xf32>
    tpu.vector_store %arg5[%c0_33, %c0_34, %c0_35, %c0_36], %105 {strides = array<i32>} : memref<2x1x8x1xf32, #tpu.memory_space<vmem>>, vector<1x1x8x1xf32>,
    %c0_37 = arith.constant 0 : index
    %c0_38 = arith.constant 0 : index
    %c0_39 = arith.constant 0 : index
    %c0_40 = arith.constant 0 : index
    %106 = vector.load %arg6[%c0_37, %c0_38, %c0_39, %c0_40] : memref<2x1x1x8xf32, #tpu.memory_space<vmem>>, vector<1x1x1x8xf32>
    %107 = vector.shape_cast %106 : vector<1x1x1x8xf32> to vector<1x8xf32>
    %108 = vector.shape_cast %71 : vector<1x8xf32> to vector<1x1x1x8xf32>
    tpu.vector_store %arg6[%c0_37, %c0_38, %c0_39, %c0_40], %108 {strides = array<i32>} : memref<2x1x1x8xf32, #tpu.memory_space<vmem>>, vector<1x1x1x8xf32>,
    %109 = vector.extract_strided_slice %3 {offsets = [0, 32], sizes = [8, 32], strides = [1, 1]} : vector<8x128xf32> to vector<8x32xf32>
    %110 = vector.extract_strided_slice %3 {offsets = [0, 96], sizes = [8, 32], strides = [1, 1]} : vector<8x128xf32> to vector<8x32xf32>
    %c1 = arith.constant 1 : index
    %c0_41 = arith.constant 0 : index
    %111 = vector.load %arg3[%c1, %c0_41] : memref<2x32xf32, #tpu.memory_space<vmem>>, vector<1x32xf32>
    %112 = vector.extract_strided_slice %110 {offsets = [0, 0], sizes = [7, 32], strides = [1, 1]} : vector<8x32xf32> to vector<7x32xf32>
    %113 = tpu.concatenate %111, %112 in 0 : vector<1x32xf32>, vector<7x32xf32> -> vector<8x32xf32>
    %114 = arith.mulf %109, %113 : vector<8x32xf32>
    %cst_42 = arith.constant dense<0.000000e+00> : vector<8xf32>
    %115 = vector.multi_reduction <add>, %114, %cst_42 [1] : vector<8x32xf32> to vector<8xf32>
    %116 = vector.shape_cast %115 : vector<8xf32> to vector<8x1xf32>
    %117 = arith.mulf %109, %109 : vector<8x32xf32>
    %cst_43 = arith.constant dense<0.000000e+00> : vector<8xf32>
    %118 = vector.multi_reduction <add>, %117, %cst_43 [1] : vector<8x32xf32> to vector<8xf32>
    %119 = vector.shape_cast %118 : vector<8xf32> to vector<8x1xf32>
    %120 = math.sqrt %119 : vector<8x1xf32>
    %cst_44 = arith.constant 9.99999993E-9 : f32
    %121 = vector.broadcast %cst_44 : f32 to vector<8x1xf32>
    %122 = arith.maximumf %120, %121 : vector<8x1xf32>
    %123 = arith.mulf %113, %113 : vector<8x32xf32>
    %cst_45 = arith.constant dense<0.000000e+00> : vector<8xf32>
    %124 = vector.multi_reduction <add>, %123, %cst_45 [1] : vector<8x32xf32> to vector<8xf32>
    %125 = vector.shape_cast %124 : vector<8xf32> to vector<8x1xf32>
    %126 = math.sqrt %125 : vector<8x1xf32>
    %cst_46 = arith.constant 9.99999993E-9 : f32
    %127 = vector.broadcast %cst_46 : f32 to vector<8x1xf32>
    %128 = arith.maximumf %126, %127 : vector<8x1xf32>
    %129 = arith.mulf %122, %128 : vector<8x1xf32>
    %130 = arith.divf %116, %129 : vector<8x1xf32>
    %cst_47 = arith.constant 1.000000e+00 : f32
    %131 = vector.broadcast %cst_47 : f32 to vector<8x1xf32>
    %132 = arith.subf %131, %130 : vector<8x1xf32>
    %cst_48 = arith.constant 5.000000e-01 : f32
    %133 = vector.broadcast %cst_48 : f32 to vector<8x1xf32>
    %134 = arith.mulf %132, %133 : vector<8x1xf32>
    %cst_49 = arith.constant 5.000000e-01 : f32
    %135 = vector.broadcast %cst_49 : f32 to vector<8x1xf32>
    %136 = arith.cmpf ogt, %134, %135 : vector<8x1xf32>
    %c0_i32_50 = arith.constant 0 : i32
    %137 = vector.broadcast %c0_i32_50 : i32 to vector<8x1xi32>
    %138 = arith.cmpi eq, %4, %137 : vector<8x1xi32>
    %139 = arith.ori %136, %138 : vector<8x1xi1>
    %140 = arith.extui %139 : vector<8x1xi1> to vector<8x1xi32>
    %141 = arith.sitofp %140 : vector<8x1xi32> to vector<8x1xf32>
    %142 = arith.extui %139 : vector<8x1xi1> to vector<8x1xi32>
    %c0_i32_51 = arith.constant 0 : i32
    %143 = vector.broadcast %c0_i32_51 : i32 to vector<1x1xi32>
    %144 = vector.extract_strided_slice %142 {offsets = [0, 0], sizes = [7, 1], strides = [1, 1]} : vector<8x1xi32> to vector<7x1xi32>
    %145 = tpu.concatenate %143, %144 in 0 : vector<1x1xi32>, vector<7x1xi32> -> vector<8x1xi32>
    %146 = arith.addi %142, %145 : vector<8x1xi32>
    %c0_i32_52 = arith.constant 0 : i32
    %147 = vector.broadcast %c0_i32_52 : i32 to vector<2x1xi32>
    %148 = vector.extract_strided_slice %146 {offsets = [0, 0], sizes = [6, 1], strides = [1, 1]} : vector<8x1xi32> to vector<6x1xi32>
    %149 = tpu.concatenate %147, %148 in 0 : vector<2x1xi32>, vector<6x1xi32> -> vector<8x1xi32>
    %150 = arith.addi %146, %149 : vector<8x1xi32>
    %c0_i32_53 = arith.constant 0 : i32
    %151 = vector.broadcast %c0_i32_53 : i32 to vector<4x1xi32>
    %152 = vector.extract_strided_slice %150 {offsets = [0, 0], sizes = [4, 1], strides = [1, 1]} : vector<8x1xi32> to vector<4x1xi32>
    %153 = tpu.concatenate %151, %152 in 0 : vector<4x1xi32>, vector<4x1xi32> -> vector<8x1xi32>
    %154 = arith.addi %150, %153 : vector<8x1xi32>
    %c1_i32_54 = arith.constant 1 : i32
    %155 = vector.broadcast %c1_i32_54 : i32 to vector<8x1xi32>
    %156 = arith.subi %154, %155 : vector<8x1xi32>
    %157 = arith.mulf %134, %141 : vector<8x1xf32>
    %158 = vector.broadcast %157 : vector<8x1xf32> to vector<8x32xf32>
    %159 = arith.mulf %1, %158 : vector<8x32xf32>
    %160 = arith.mulf %134, %141 : vector<8x1xf32>
    %cst_55 = arith.constant 0.000000e+00 : f32
    %161 = vector.broadcast %cst_55 : f32 to vector<8x32xf32>
    %cst_56 = arith.constant 0.000000e+00 : f32
    %162 = vector.broadcast %cst_56 : f32 to vector<8x1xf32>
    %cst_57 = arith.constant 0.000000e+00 : f32
    %163 = vector.broadcast %cst_57 : f32 to vector<1x8xf32>
    %164 = vector.broadcast %156 : vector<8x1xi32> to vector<8x8xi32>
    %165 = arith.cmpi eq, %164, %5 : vector<8x8xi32>
    %166 = arith.extui %165 : vector<8x8xi1> to vector<8x8xi32>
    %167 = arith.sitofp %166 : vector<8x8xi32> to vector<8x8xf32>
    %cst_58 = arith.constant dense<0.000000e+00> : vector<8x32xf32>
    %168 = tpu.matmul %167, %159, %cst_58 {dimension_numbers = #tpu.dot_dimension_numbers<[0], [0], [1], [1], [0, 1, 1, 1], [], []>} : vector<8x8xf32>, vector<8x32xf32>, vector<8x32xf32> -> vector<8x32xf32>
    %169 = arith.addf %161, %168 : vector<8x32xf32>
    %cst_59 = arith.constant dense<0.000000e+00> : vector<8x1xf32>
    %170 = tpu.matmul %167, %160, %cst_59 {dimension_numbers = #tpu.dot_dimension_numbers<[0], [0], [1], [1], [0, 1, 1, 1], [], []>} : vector<8x8xf32>, vector<8x1xf32>, vector<8x1xf32> -> vector<8x1xf32>
    %171 = arith.addf %162, %170 : vector<8x1xf32>
    %cst_60 = arith.constant dense<0.000000e+00> : vector<8xf32>
    %172 = vector.multi_reduction <add>, %167, %cst_60 [0] : vector<8x8xf32> to vector<8xf32>
    %173 = vector.shape_cast %172 : vector<8xf32> to vector<1x8xf32>
    %174 = arith.addf %163, %173 : vector<1x8xf32>
    %cst_61 = arith.constant 1.000000e+00 : f32
    %175 = vector.broadcast %cst_61 : f32 to vector<8x1xf32>
    %176 = arith.subf %175, %171 : vector<8x1xf32>
    %cst_62 = arith.constant 0.000000e+00 : f32
    %177 = vector.broadcast %cst_62 : f32 to vector<1x32xf32>
    %178 = vector.extract_strided_slice %169 {offsets = [0, 0], sizes = [7, 32], strides = [1, 1]} : vector<8x32xf32> to vector<7x32xf32>
    %179 = tpu.concatenate %177, %178 in 0 : vector<1x32xf32>, vector<7x32xf32> -> vector<8x32xf32>
    %180 = vector.broadcast %176 : vector<8x1xf32> to vector<8x32xf32>
    %181 = arith.mulf %180, %179 : vector<8x32xf32>
    %182 = arith.addf %181, %169 : vector<8x32xf32>
    %cst_63 = arith.constant 1.000000e+00 : f32
    %183 = vector.broadcast %cst_63 : f32 to vector<1x1xf32>
    %184 = vector.extract_strided_slice %176 {offsets = [0, 0], sizes = [7, 1], strides = [1, 1]} : vector<8x1xf32> to vector<7x1xf32>
    %185 = tpu.concatenate %183, %184 in 0 : vector<1x1xf32>, vector<7x1xf32> -> vector<8x1xf32>
    %186 = arith.mulf %176, %185 : vector<8x1xf32>
    %cst_64 = arith.constant 0.000000e+00 : f32
    %187 = vector.broadcast %cst_64 : f32 to vector<2x32xf32>
    %188 = vector.extract_strided_slice %182 {offsets = [0, 0], sizes = [6, 32], strides = [1, 1]} : vector<8x32xf32> to vector<6x32xf32>
    %189 = tpu.concatenate %187, %188 in 0 : vector<2x32xf32>, vector<6x32xf32> -> vector<8x32xf32>
    %190 = vector.broadcast %186 : vector<8x1xf32> to vector<8x32xf32>
    %191 = arith.mulf %190, %189 : vector<8x32xf32>
    %192 = arith.addf %191, %182 : vector<8x32xf32>
    %cst_65 = arith.constant 1.000000e+00 : f32
    %193 = vector.broadcast %cst_65 : f32 to vector<2x1xf32>
    %194 = vector.extract_strided_slice %186 {offsets = [0, 0], sizes = [6, 1], strides = [1, 1]} : vector<8x1xf32> to vector<6x1xf32>
    %195 = tpu.concatenate %193, %194 in 0 : vector<2x1xf32>, vector<6x1xf32> -> vector<8x1xf32>
    %196 = arith.mulf %186, %195 : vector<8x1xf32>
    %cst_66 = arith.constant 0.000000e+00 : f32
    %197 = vector.broadcast %cst_66 : f32 to vector<4x32xf32>
    %198 = vector.extract_strided_slice %192 {offsets = [0, 0], sizes = [4, 32], strides = [1, 1]} : vector<8x32xf32> to vector<4x32xf32>
    %199 = tpu.concatenate %197, %198 in 0 : vector<4x32xf32>, vector<4x32xf32> -> vector<8x32xf32>
    %200 = vector.broadcast %196 : vector<8x1xf32> to vector<8x32xf32>
    %201 = arith.mulf %200, %199 : vector<8x32xf32>
    %202 = arith.addf %201, %192 : vector<8x32xf32>
    %c1_67 = arith.constant 1 : index
    %c0_68 = arith.constant 0 : index
    %c0_69 = arith.constant 0 : index
    %c0_70 = arith.constant 0 : index
    %203 = vector.load %arg4[%c1_67, %c0_68, %c0_69, %c0_70] : memref<2x1x8x32xf32, #tpu.memory_space<vmem>>, vector<1x1x8x32xf32>
    %204 = vector.shape_cast %203 : vector<1x1x8x32xf32> to vector<8x32xf32>
    %205 = vector.shape_cast %202 : vector<8x32xf32> to vector<1x1x8x32xf32>
    tpu.vector_store %arg4[%c1_67, %c0_68, %c0_69, %c0_70], %205 {strides = array<i32>} : memref<2x1x8x32xf32, #tpu.memory_space<vmem>>, vector<1x1x8x32xf32>,
    %c1_71 = arith.constant 1 : index
    %c0_72 = arith.constant 0 : index
    %c0_73 = arith.constant 0 : index
    %c0_74 = arith.constant 0 : index
    %206 = vector.load %arg5[%c1_71, %c0_72, %c0_73, %c0_74] : memref<2x1x8x1xf32, #tpu.memory_space<vmem>>, vector<1x1x8x1xf32>
    %207 = vector.shape_cast %206 : vector<1x1x8x1xf32> to vector<8x1xf32>
    %208 = vector.shape_cast %134 : vector<8x1xf32> to vector<1x1x8x1xf32>
    tpu.vector_store %arg5[%c1_71, %c0_72, %c0_73, %c0_74], %208 {strides = array<i32>} : memref<2x1x8x1xf32, #tpu.memory_space<vmem>>, vector<1x1x8x1xf32>,
    %c1_75 = arith.constant 1 : index
    %c0_76 = arith.constant 0 : index
    %c0_77 = arith.constant 0 : index
    %c0_78 = arith.constant 0 : index
    %209 = vector.load %arg6[%c1_75, %c0_76, %c0_77, %c0_78] : memref<2x1x1x8xf32, #tpu.memory_space<vmem>>, vector<1x1x1x8xf32>
    %210 = vector.shape_cast %209 : vector<1x1x1x8xf32> to vector<1x8xf32>
    %211 = vector.shape_cast %174 : vector<1x8xf32> to vector<1x1x1x8xf32>
    tpu.vector_store %arg6[%c1_75, %c0_76, %c0_77, %c0_78], %211 {strides = array<i32>} : memref<2x1x1x8xf32, #tpu.memory_space<vmem>>, vector<1x1x1x8xf32>,
    return
  }
  func.func @transform_0(%arg0: i32) -> (i32, i32, i32) {
    %c0_i32 = arith.constant 0 : i32
    %c0_i32_0 = arith.constant 0 : i32
    %c0_i32_1 = arith.constant 0 : i32
    return %arg0, %c0_i32, %c0_i32_0 : i32, i32, i32
  }
  func.func @transform_1(%arg0: i32) -> (i32, i32) {
    %c0_i32 = arith.constant 0 : i32
    %c0_i32_0 = arith.constant 0 : i32
    %c0_i32_1 = arith.constant 0 : i32
    return %c0_i32, %c0_i32_0 : i32, i32
  }
  func.func @transform_2(%arg0: i32) -> (i32, i32) {
    %c0_i32 = arith.constant 0 : i32
    %c0_i32_0 = arith.constant 0 : i32
    %c0_i32_1 = arith.constant 0 : i32
    return %c0_i32, %c0_i32_0 : i32, i32
  }
  func.func @transform_3(%arg0: i32) -> (i32, i32, i32, i32) {
    %c0_i32 = arith.constant 0 : i32
    %c0_i32_0 = arith.constant 0 : i32
    %c0_i32_1 = arith.constant 0 : i32
    %c0_i32_2 = arith.constant 0 : i32
    return %c0_i32, %arg0, %c0_i32_0, %c0_i32_1 : i32, i32, i32, i32
  }
  func.func @transform_4(%arg0: i32) -> (i32, i32, i32, i32) {
    %c0_i32 = arith.constant 0 : i32
    %c0_i32_0 = arith.constant 0 : i32
    %c0_i32_1 = arith.constant 0 : i32
    %c0_i32_2 = arith.constant 0 : i32
    return %c0_i32, %arg0, %c0_i32_0, %c0_i32_1 : i32, i32, i32, i32
  }
  func.func @transform_5(%arg0: i32) -> (i32, i32, i32, i32) {
    %c0_i32 = arith.constant 0 : i32
    %c0_i32_0 = arith.constant 0 : i32
    %c0_i32_1 = arith.constant 0 : i32
    %c0_i32_2 = arith.constant 0 : i32
    return %c0_i32, %arg0, %c0_i32_0, %c0_i32_1 : i32, i32, i32, i32
  }
}

</mosaic_0001>

<bundles_post_ra>
// kernel: tpu_custom_call.1
= control target key start
LH: loop header
LB: loop body
LE: loop exit
PB: predicated region body
PF: predicated region fallthrough
CT: control target
= control target key end

     0   :  { %11 = vsyncpa [#allocation3], 0  ;;  %s2446_s0 = inlined_call_operand.hbm [shape: f32[2,8,32], index: 0, kind: input, shape index: {}]   ;;  %s2447_s1 = inlined_call_operand.hbm [shape: f32[32,128], index: 1, kind: input, shape index: {}]   ;;  %s2448_s2 = inlined_call_operand.vmem [shape: f32[2,32], index: 2, kind: input, shape index: {}]   ;;  %s2449_s3 = inlined_call_operand.hbm [shape: f32[2,2,8,32], index: 3, kind: output, shape index: {0}]   ;;  %s2450_s4 = inlined_call_operand.vmem [shape: f32[2,2,8,1], index: 4, kind: output, shape index: {1}]   ;;  %s2451_s5 = inlined_call_operand.hbm [shape: f32[2,2,1,8], index: 5, kind: output, shape index: {2}]  }
   0x1   :  { %13 = vsyncpa [#allocation3 + $0x1], 0 }
   0x2   :  { %14 = vsyncpa [#allocation6], 0 }
   0x3   :  { %15 = vsyncpa [#allocation4], 0 }
   0x4   :  { %17 = vsyncpa [#allocation4 + $0x1], 0 }
   0x5   :  { %18 = vsyncpa [#allocation10], 0 }
   0x6   :  { %20 = vsyncpa [#allocation10 + $0x1], 0  ;;  %s2092_s18 = smov 0   ;;  %s2094_s19 = smov 0  }
   0x7   :  { %s2096_s20 = smov 0   ;;  %s2098_s21 = smov 0  }
   0x8 LB: > { %s2113_s22 = sadd.s32 4294967295, %s2042_s21   ;;  %s1590_s23 = sadd.s32 4294967294, %s2042_s21   ;;  %s2042_s21 = sphi %s2098_s21, %s2471_s21   ;;  %s2038_s20 = sphi %s2096_s20, %s2470_s20   ;;  %s2034_s19 = sphi %s2094_s19, %s2469_s19   ;;  %s2030_s18 = sphi %s2092_s18, %s2468_s18  }
   0x9   : > { %p46_p0 = scmp.ne.s32.totalorder %s2034_s19, %s2030_s18  ;;  %p2452_p1 = scmp.eq.s32.totalorder %s2113_s22, 0 }
   0xa   : > { %p118_p3 = scmp.eq.s32.totalorder %s1590_s23, 1  ;;  %p1591_p5 = scmp.ge.s32.totalorder %s2042_s21, 1 }
   0xb   : > { %p2122_p4 = por %p2452_p1, %p46_p0  ;;  %p177_p7 = scmp.lt.s32.totalorder %s2042_s21, 3 }
   0xc   : > { %p2127_p6 = por %p118_p3, %p46_p0  ;;  %s2044_s27 = smov [#allocation5]  }
   0xd   : > { %s2455_s24 = scalar_select %p2122_p4, 1, 0 }
   0xe   : > { %s2456_s25 = scalar_select %p2127_p6, 1, 0 }
   0xf   : > { %p2132_p8 = pnand %p1591_p5, %p177_p7  ;;  %s189_s28 = sshll.u32 %s2044_s27, 4  ;;  %s2136_s28 = int_to_ptr.vmem [resolvable:$true] %s189_s28 }
  0x10   : > { %s2148_s30 = sadd.s32 1, %s2042_s21   ;;  %s33_s6 = sadd.s32 1, %s2038_s20 }
  0x11   : > { %s2457_s26 = scalar_select %p2132_p8, 1, 0 }
  0x12   : > { %p1802_p9 = pneg %p2132_p8  ;;  %s30_s7 = ssub.s32 %s2042_s21, %s2148_s30 }
  0x13   : > { %s1882_s10 = scalar_lea.hbm %s2447_s1, 512 }
  0x14   : > { %p2143_p11 = pnand %p1802_p9, %p2452_p1  ;;  %p1883_p12 = scmp.ne.s32.totalorder %s2447_s1, %s1882_s10 }
  0x15   : > { %p1889_p5 = scmp.lt.u32.totalorder %s1882_s10, %s2447_s1 }
  0x16   : > { %p1884_p13 = pneg %p2143_p11 }
  0x18   : > { %p1885_p0 = pnand %p1884_p13, %p1883_p12 }
  0x1a   : > { %p1886_p3 = pneg %p1885_p0 }
  0x1c   : > { %p1891_p7 = pnand %p1889_p5, %p1886_p3 }
  0x1e   : > { %1894 = shalt.err (!%p1891_p7)
}
  0x1f   : > { %s1895_s15 = scalar_lea.vmem %s2136_s28, 512  ;;  %p1903_p2 = scmp.lt.s32.totalorder %s2136_s28, %s2136_s28 }
  0x20   : > { %p1896_p9 = scmp.ne.s32.totalorder %s2136_s28, %s1895_s15  ;;  %p1904_p6 = scmp.lt.s32.totalorder %s1895_s15, %s1895_s15 }
  0x22   : > { %p1898_p10 = pnand %p1896_p9, %p1884_p13  ;;  %p1905_p4 = por %p1904_p6, %p1903_p2 }
  0x24   : > { %p1899_p1 = pneg %p1898_p10 }
  0x26   : > { %p1906_p8 = pnand %p1905_p4, %p1899_p1 }
  0x28   : > { %1909 = shalt.err (!%p1906_p8)
}
  0x29   : > { %s2045_s16 = smov 128   ;;  %s2046_s17 = smov 8  }
  0x2a   : > { %1805 = dma.hbm_to_vmem [thread:$0]  (!%p2143_p11), %s2447_s1, 512, %s2136_s28, [#allocation6], %s2045_s16, %s2045_s16, %s2046_s17  }
  0x2b   : > { %p31_p2 = scmp.eq.s32.totalorder %s30_s7, 0  ;;  %p40_p1 = scmp.ne.s32.totalorder %s2038_s20, %s2034_s19 }
  0x2c   : > { %p41_p4 = scmp.eq.s32.totalorder %s2042_s21, 0  ;;  %p1818_p6 = scmp.lt.s32.totalorder %s2042_s21, 2 }
  0x2d   : > { %s2179_s8 = scalar_select %p31_p2, %s2038_s20, %s33_s6  }
  0x2e   : > { %p42_p8 = por %p41_p4, %p40_p1  ;;  %p2459_p10 = scmp.eq.s32.totalorder %s2113_s22, 1 }
  0x2f   : > { %s206_s10 = sand.u32 1, %s2038_s20   ;;  %s1595_s11 = sshll.u32 %s2042_s21, 7 }
  0x30   : > { %p2183_p12 = por %p2459_p10, %p40_p1  ;;  %s1594_s12 = sshll.u32 %s206_s10, 3 }
  0x31   : > { %s2192_s14 = scalar_lea.hbm %s2446_s0, %s1595_s11  ;;  %s210_s28 = scalar_lea.vmem [#allocation2], %s1594_s12 }
  0x32   : > { %s217_s6 = sshll.u32 %s210_s28, 4  ;;  %p2194_p11 = pnand %p1818_p6, %p42_p8  ;;  %s2198_s6 = int_to_ptr.vmem [resolvable:$true] %s217_s6 }
  0x33   : > { %s207_s15 = scalar_lea.sflag [#allocation3], %s206_s10  ;;  %s1910_s16 = scalar_lea.hbm %s2192_s14, 128 }
  0x34   : > { %p1911_p13 = scmp.ne.s32.totalorder %s2192_s14, %s1910_s16  ;;  %p1912_p0 = pneg %p2194_p11 }
  0x35   : > { %s1915_s27 = scalar_lea.hbm %s2446_s0, 256  ;;  %p1916_p7 = scmp.lt.u32.totalorder %s2192_s14, %s2446_s0 }
  0x36   : > { %p1913_p3 = pnand %p1912_p0, %p1911_p13  ;;  %p1917_p9 = scmp.lt.u32.totalorder %s1915_s27, %s1910_s16 }
  0x37   : > { %p1919_p1 = scmp.lt.u32.totalorder %s1910_s16, %s2192_s14 }
  0x38   : > { %p1914_p5 = pneg %p1913_p3  ;;  %p1918_p2 = por %p1917_p9, %p1916_p7 }
  0x3a   : > { %p1920_p4 = por %p1919_p1, %p1918_p2 }
  0x3c   : > { %p1921_p6 = pnand %p1920_p4, %p1914_p5 }
  0x3e   : > { %1924 = shalt.err (!%p1921_p6)
}
  0x3f   : > { %s1925_s10 = scalar_lea.vmem %s2198_s6, 128  ;;  %s2047_s29 = smov [#allocation2]  }
  0x40   : > { %p1926_p8 = scmp.ne.s32.totalorder %s2198_s6, %s1925_s10  ;;  %s1930_s13 = sshll.u32 %s2047_s29, 4  ;;  %s1931_s13 = int_to_ptr.vmem [resolvable:$false] %s1930_s13 }
  0x41   : > { %s1932_s28 = scalar_lea.vmem %s1931_s13, 256  ;;  %p1933_p3 = scmp.lt.s32.totalorder %s2198_s6, %s1931_s13 }
  0x42   : > { %p1928_p10 = pnand %p1926_p8, %p1912_p0  ;;  %p1934_p7 = scmp.lt.s32.totalorder %s1932_s28, %s1925_s10 }
  0x44   : > { %p1929_p13 = pneg %p1928_p10  ;;  %p1935_p9 = por %p1934_p7, %p1933_p3 }
  0x46   : > { %p1936_p2 = pnand %p1935_p9, %p1929_p13 }
  0x48   : > { %1939 = shalt.err (!%p1936_p2)
}
  0x49   : > { %1809 = dma.hbm_to_vmem [thread:$0]  (!%p2194_p11), %s2192_s14, 128, %s2198_s6, %s207_s15  }
  0x4a   : > { %p2462_p5 = scmp.ne.s32.totalorder %s2457_s26, 0 }
  0x4b   : > { %s2228_s16 = sand.u32 (!%p2462_p5), 1, %s2034_s19   ;;  %p2463_p0 = scmp.ne.s32.totalorder (!%p2462_p5), %s2455_s24, 0 }
  0x4c   : > { %226 = sbr.rel (%p2462_p5) target bundleno = 1529 (0x5f9), region = 32  ;;  %s1597_s17 = sshll.u32 (!%p2462_p5), %s2228_s16, 3 }
  0x4d   : > { %s229_s23 = scalar_lea.sflag (!%p2462_p5), [#allocation3], %s2228_s16  ;;  %s232_s27 = scalar_lea.vmem (!%p2462_p5), [#allocation2], %s1597_s17 }
  0x53   : > { %2013 = dma.done.wait (%p2463_p0), %s229_s23, 128  }
  0x54   : > { %2015 = vsyncadd (%p2463_p0), %s229_s23, 4294967168  ;;  %p2464_p1 = scmp.eq.s32.totalorder %s2113_s22, 0 }
  0x56   : > { %2017 = dma.done.wait (%p2464_p1), [#allocation6], 512   ;;  %p2465_p11 = pmov %p2464_p1 }
  0x57   : > { %v2048_v0 = vmov 0.0|0.0   ;;  %vm2049_vm0 = vmmov 0   ;;  %v2050_v1 = vmov 0.0   ;;  %vm277_vm1 = vcmask 261120   ;;  %v273_v2 = vld [vmem:[#allocation5] sm:$0xff]  ;;  %v274_v3 = vld [vmem:[#allocation5 + $0x8] sm:$0xff] }
  0x58   : > { %2019 = vsyncadd (%p2465_p11), [#allocation6], 4294966784  ;;  %1759 = vmatprep.subr.bf16.mxu0 %v2048_v0  ;;  %1691 = vmatprep.mubr.msk.f32.mxu0 %vm2049_vm0, %v2050_v1  ;;  %v275_v4 = vld [vmem:[#allocation5 + $0x10] sm:$0xff]  ;;  %v282_v5 = vand.u32 4294901760, %v273_v2  ;;  %v285_v6 = vand.u32 4294901760, %v274_v3  ;;  %v276_v7 = vld [vmem:[#allocation5 + $0x18] sm:$0xff] }
  0x59   : > { %1747 = vmatprep.subr.bf16.mxu1 %v2048_v0  ;;  %1669 = vmatprep.mubr.msk.f32.mxu1 %vm2049_vm0, %v2050_v1  ;;  %v288_v8 = vand.u32 4294901760, %v275_v4  ;;  %v2246_v9 = vld [vmem:[%s232_s27] sm:$0xff]  ;;  %v291_v10 = vand.u32 4294901760, %v276_v7  ;;  %s2051_s24 = smov 64   ;;  %s2052_s26 = smov 32   ;;  %vm776_vm2 = vcmask 1040384  }
  0x5a   : > { %v279_v11 = vsel %vm277_vm1, %v2246_v9, 0  ;;  %v362_v12 = vsub.f32 %v273_v2, %v282_v5  ;;  %v369_v13 = vsub.f32 %v274_v3, %v285_v6  ;;  %v1748_v17 = vpack.c.bf16 %v285_v6, %v282_v5  ;;  %s2053_s14 = smov 96   ;;  %v1067_v49 = vld [vmem:[%s2448_s2 + $0x1] sm:$0x1]  ;;  %v770_v56 = vld [vmem:[%s2448_s2] sm:$0x1] }
  0x5b   : > { %v376_v14 = vsub.f32 %v275_v4, %v288_v8  ;;  %v350_v15 = vand.u32 4294901760, %v279_v11  ;;  %v383_v16 = vsub.f32 %v276_v7, %v291_v10  ;;  %v1751_v22 = vpack.c.bf16 %v291_v10, %v288_v8  ;;  %s1599_s12 = sshll.u32 %s2228_s16, 4  ;;  %s1601_s29 = sshll.u32 %s2228_s16, 1 }
  0x5c   : > { %v363_v18 = vand.u32 4294901760, %v362_v12  ;;  %v370_v19 = vand.u32 4294901760, %v369_v13  ;;  %v1760_v20 = vpack.c.bf16 %v369_v13, %v362_v12  ;;  %1749 = vmatpush3.bf16.msra.mxu1 %v1748_v17  ;;  %v2054_v2 = vmov 0   ;;  %s2293_s10 = scalar_lea.vmem [#allocation8], %s1599_s12  ;;  %s2320_s13 = scalar_lea.vmem [#allocation9], %s1601_s29 }
  0x5d   : > { %v351_v21 = vsub.f32 %v279_v11, %v350_v15  ;;  %v377_v23 = vand.u32 4294901760, %v376_v14  ;;  %v384_v24 = vand.u32 4294901760, %v383_v16  ;;  %v1763_v25 = vpack.c.bf16 %v383_v16, %v376_v14  ;;  %1750 = vmatprep.subr.bf16.mxu1 %v2048_v0  ;;  %1868 = vset.pattern.permute.xlu0 %v2054_v2  ;;  %s258_s28 = scalar_lea.vmem [#allocation7], %s1599_s12  ;;  %s1618_s23 = sshll.u32 %s2113_s22, 7 }
  0x5e   : > { %1761 = vmatpush3.bf16.msra.mxu0 %v1760_v20  ;;  %v364_v27 = vsub.f32 %v362_v12, %v363_v18  ;;  %v371_v28 = vsub.f32 %v369_v13, %v370_v19  ;;  %v1772_v39 = vpack.c.bf16 %v370_v19, %v363_v18  ;;  %1869 = vset.pattern.permute.xlu1 %v2054_v2  ;;  %vm1063_vm7 = vcmask 7168   ;;  %s1391_s17 = sshll.u32 %s258_s28, 4  ;;  %s1370_s6 = scalar_lea.sflag [#allocation4], %s2228_s16  ;;  %s2354_s17 = int_to_ptr.vmem [resolvable:$true] %s1391_s17 }
  0x5f   : > { %v352_v26 = vand.u32 4294901760, %v351_v21  ;;  %1762 = vmatprep.subr.bf16.mxu0 %v2048_v0  ;;  %v378_v29 = vsub.f32 %v376_v14, %v377_v23  ;;  %v385_v30 = vsub.f32 %v383_v16, %v384_v24  ;;  %v1775_v40 = vpack.c.bf16 %v384_v24, %v377_v23  ;;  %s1940_s7 = scalar_lea.vmem %s2354_s17, 256  ;;  %s2055_s15 = smov [#allocation7]  }
  0x60   : > { %v365_v32 = vand.u32 4294901760, %v364_v27  ;;  %v372_v33 = vand.u32 4294901760, %v371_v28  ;;  %1752 = vmatpush3.bf16.msra.mxu1 %v1751_v22  ;;  %vm820_vm11 = vcmask 1041408   ;;  %vm824_vm12 = vcmask 1043456   ;;  %p1941_p4 = scmp.ne.s32.totalorder %s2354_s17, %s1940_s7  ;;  %s1944_s11 = sshll.u32 %s2055_s15, 4  ;;  %s1945_s11 = int_to_ptr.vmem [resolvable:$false] %s1944_s11 }
  0x61   : > { %v353_v31 = vsub.f32 %v351_v21, %v352_v26  ;;  %v379_v34 = vand.u32 4294901760, %v378_v29  ;;  %v386_v35 = vand.u32 4294901760, %v385_v30  ;;  %1753 = vmatprep.subr.bf16.mxu1 %v2048_v0  ;;  %s1946_s12 = scalar_lea.vmem %s1945_s11, 512  ;;  %p1947_p10 = scmp.lt.s32.totalorder %s2354_s17, %s1945_s11 }
  0x62   : > { %1764 = vmatpush3.bf16.msra.mxu0 %v1763_v25  ;;  %v1754_v37 = vpack.c.bf16 %v372_v33, %v365_v32  ;;  %p1942_p6 = pnand %p1941_p4, %p2183_p12  ;;  %p1948_p13 = scmp.lt.s32.totalorder %s1946_s12, %s1940_s7 }
  0x63   : > { %v354_v36 = vand.u32 4294901760, %v353_v31  ;;  %1765 = vmatprep.subr.bf16.mxu0 %v2048_v0  ;;  %v1757_v38 = vpack.c.bf16 %v386_v35, %v379_v34 }
  0x64   : > { %p1943_p8 = pneg %p1942_p6  ;;  %p1949_p3 = por %p1948_p13, %p1947_p10 }
  0x65   : > { %1670 = vmatmul.mubr.f32.vlgmr.msra.gmra.mrb[0].mxu1 %v354_v36  ;;  %1692 = vmatmul.mubr.f32.vlgmr.msra.gmra.mrb[0].mxu0 %v351_v21 }
  0x66   : > { %1755 = vmatpush3.bf16.msra.mxu1 %v1754_v37  ;;  %1767 = vmatpush3.bf16.msra.mxu0 %v1748_v17  ;;  %p1950_p7 = pnand %p1949_p3, %p1943_p8 }
  0x67   : > { %1702 = vmatprep.mubr.msk.f32.mxu0 %vm2049_vm0, %v2050_v1  ;;  %1768 = vmatprep.subr.bf16.mxu0 %v2048_v0 }
  0x68   : > { %1756 = vmatprep.subr.bf16.mxu1 %v2048_v0  ;;  %1680 = vmatprep.mubr.msk.f32.mxu1 %vm2049_vm0, %v2050_v1 }
  0x6a   : > { %1758 = vmatpush3.bf16.msra.mxu1 %v1757_v38  ;;  %1770 = vmatpush3.bf16.msra.mxu0 %v1751_v22 }
  0x6b   : > { %1727 = vmatprep.subr.mxu1 %v2050_v1  ;;  %1771 = vmatprep.subr.bf16.mxu0 %v2048_v0 }
  0x6d   : > { %1681 = vmatmul.mubr.f32.vlgmr.msra.gmra.mrb[0].mxu1 %v350_v15  ;;  %1703 = vmatmul.mubr.f32.vlgmr.msra.gmra.mrb[0].mxu0 %v352_v26 }
  0x6e   : > { %1729 = vmatprep.mubr.msk.f32.mxu1 %vm2049_vm0, %v2050_v1  ;;  %1773 = vmatpush3.bf16.msra.mxu0 %v1772_v39 }
  0x6f   : > { %1713 = vmatprep.mubr.msk.f32.mxu0 %vm2049_vm0, %v2050_v1  ;;  %1774 = vmatprep.subr.bf16.mxu0 %v2048_v0 }
  0x72   : > { %1776 = vmatpush3.bf16.msra.mxu0 %v1775_v40 }
  0x73   : > { %1777 = vmatprep.subr.bf16.mxu0 %v2048_v0 }
  0x75   : > { %1714 = vmatmul.mubr.f32.vlgmr.msra.gmra.mrb[0].mxu0 %v350_v15 }
  0x76   : > { %1779 = vmatpush3.bf16.msra.mxu0 %v1748_v17  ;;  %1724 = vmatprep.mubr.msk.f32.mxu0 %vm2049_vm0, %v2050_v1 }
  0x77   : > { %1780 = vmatprep.subr.bf16.mxu0 %v2048_v0 }
  0x7a   : > { %1782 = vmatpush3.bf16.msra.mxu0 %v1751_v22  ;;  %v766_v22 = vlaneseq }
  0x7c   : > { %v767_v25 = vshrl.u32 %v766_v22, 7 }
  0x7d   : > { %1725 = vmatmul.mubr.f32.vlgmr.msra.gmra.mrb[0].mxu0 %v350_v15 }
  0x7e   : > { %vm812_vm8 = vcmp.eq.s32.totalorder %v767_v25, 0 }
 0x140   : > { %v447_v41 = vpop.f32.mrb[0].mxu1 }
 0x141   : > { %v1682_v42 = vpop.f32.mrb[1].mxu1 }
 0x150   : > { %v762_v43 = vpop.f32.mrb[0].mxu0 }
 0x151   : > { %v1783_v44 = vadd.f32 %v762_v43, %v447_v41  ;;  %v1726_v45 = vpop.f32.mrb[1].mxu0 }
 0x153   : > { %v772_v46 = vrot.slane %v1783_v44, 7  ;;  %v782_v47 = vmul.f32 %v1783_v44, %v1783_v44 }
 0x155   : > { %773 = vrot.lane.b32.xlu1 %v772_v46, %s2051_s24  ;;  %1068 = vrot.lane.b32.xlu0 %v772_v46, %s2052_s26  ;;  %v783_v48 = vsel %vm277_vm1, %v782_v47, 0.0 }
 0x159   : > { %1085 = vrot.lane.b32.xlu1 %v782_v47, %s2053_s14 }
 0x17d   : > { %784 = vadd.xlane.f32.xlu1 %v783_v48 }
 0x1c7   : > { %v1069_v50 = vpop.permute.xlu0 %1068  ;;  %v774_v57 = vpop.permute.xlu1 %773 }
 0x1c8   : > { %v1071_v51 = vsel %vm776_vm2, %v1067_v49, %v1069_v50  ;;  %v777_v58 = vsel %vm776_vm2, %v770_v56, %v774_v57 }
 0x1c9   : > { %1073 = vrot.lane.b32.xlu0 %v1071_v51, %s2052_s26  ;;  %v1099_v52 = vmul.f32 %v1071_v51, %v1071_v51  ;;  %v794_v59 = vmul.f32 %v777_v58, %v777_v58  ;;  %v778_v63 = vmul.f32 %v1783_v44, %v777_v58 }
 0x1cb   : > { %v1100_v53 = vsel %vm277_vm1, %v1099_v52, 0.0  ;;  %v795_v60 = vsel %vm277_vm1, %v794_v59, 0.0  ;;  %v1086_v61 = vpop.permute.xlu1 %1085  ;;  %v779_v0 = vsel %vm277_vm1, %v778_v63, 0.0 }
 0x1cc   : > { %1101 = vadd.xlane.f32.xlu1 %v1100_v53  ;;  %v1088_v62 = vsel %vm277_vm1, %v1086_v61, 0.0 }
 0x20a   : > { %v785_v5 = vpop.xlane.xlu1 %784 }
 0x20b   : > { %1870 = vrsqrt.f32 %v785_v5  ;;  %vm788_vm3 = vcmp.eq.f32.partialorder %v785_v5, inf  ;;  %v791_v12 = vand.u32 2147483648, %v785_v5  ;;  %vm790_vm4 = vcmp.eq.f32.partialorder %v785_v5, 0.0 }
 0x215   : > { %v1871_v7 = vpop.eup %1870 }
 0x216   : > { %v787_v8 = vmul.f32 %v1871_v7, %v785_v5 }
 0x218   : > { %v789_v10 = vsel %vm788_vm3, %v785_v5, %v787_v8 }
 0x219   : > { %v792_v14 = vsel %vm790_vm4, %v791_v12, %v789_v10 }
 0x21a   : > { %v793_v18 = vmax.f32 %v792_v14, 1e-08 }
 0x23b   : > { %v1074_v54 = vpop.permute.xlu0 %1073 }
 0x23c   : > { %v1076_v55 = vmul.f32 %v1783_v44, %v1074_v54 }
 0x23e   : > { %1078 = vrot.lane.b32.xlu0 %v1076_v55, %s2053_s14  ;;  %s2359_s14 = scalar_lea.hbm %s2449_s3, %s1618_s23 }
 0x259   : > { %v1102_v35 = vpop.xlane.xlu1 %1101 }
 0x25a   : > { %vm1105_vm14 = vcmp.eq.f32.partialorder %v1102_v35, inf  ;;  %v1108_v51 = vand.u32 2147483648, %v1102_v35  ;;  %vm1107_vm3 = vcmp.eq.f32.partialorder %v1102_v35, 0.0 }
 0x25d   : > { %796 = vadd.xlane.f32.xlu0 %v795_v60 }
 0x261   : > { %1089 = vadd.xlane.f32.xlu0 %v1088_v62 }
 0x265   : > { %780 = vadd.xlane.f32.xlu0 %v779_v0 }
 0x2b0   : > { %v1079_v3 = vpop.permute.xlu0 %1078 }
 0x2b1   : > { %v1081_v4 = vsel %vm277_vm1, %v1079_v3, 0.0 }
 0x2b2   : > { %1082 = vadd.xlane.f32.xlu1 %v1081_v4 }
 0x2ea   : > { %v797_v6 = vpop.xlane.xlu0 %796 }
 0x2eb   : > { %1872 = vrsqrt.f32 %v797_v6  ;;  %vm800_vm5 = vcmp.eq.f32.partialorder %v797_v6, inf  ;;  %v803_v15 = vand.u32 2147483648, %v797_v6  ;;  %vm802_vm6 = vcmp.eq.f32.partialorder %v797_v6, 0.0 }
 0x2ee   : > { %v1090_v21 = vpop.xlane.xlu0 %1089 }
 0x2ef   : > { %vm1093_vm13 = vcmp.eq.f32.partialorder %v1090_v21, inf  ;;  %v1096_v49 = vand.u32 2147483648, %v1090_v21  ;;  %vm1095_vm15 = vcmp.eq.f32.partialorder %v1090_v21, 0.0 }
 0x2f2   : > { %v781_v24 = vpop.xlane.xlu0 %780 }
 0x2f5   : > { %v1873_v11 = vpop.eup %1872 }
 0x2f6   : > { %v799_v13 = vmul.f32 %v1873_v11, %v797_v6 }
 0x2f8   : > { %v801_v16 = vsel %vm800_vm5, %v797_v6, %v799_v13 }
 0x2f9   : > { %v804_v17 = vsel %vm802_vm6, %v803_v15, %v801_v16  ;;  %vm868_vm6 = vcmask 64512  }
 0x2fa   : > { %v805_v19 = vmax.f32 %v804_v17, 1e-08 }
 0x2fc   : > { %v806_v20 = vmul.f32 %v805_v19, %v793_v18 }
 0x2fe   : > { %1874 = vrcp.f32 %v806_v20 }
 0x2ff   : > { %1876 = vrsqrt.f32 %v1090_v21 }
 0x300   : > { %1878 = vrsqrt.f32 %v1102_v35 }
 0x308   : > { %v1875_v23 = vpop.eup %1874 }
 0x309   : > { %v808_v26 = vmul.f32 %v1875_v23, %v781_v24  ;;  %v1877_v43 = vpop.eup %1876 }
 0x30a   : > { %v1879_v45 = vpop.eup %1878  ;;  %v1092_v46 = vmul.f32 %v1877_v43, %v1090_v21 }
 0x30b   : > { %v809_v27 = vsub.f32 1.0, %v808_v26  ;;  %v1104_v47 = vmul.f32 %v1879_v45, %v1102_v35 }
 0x30c   : > { %v1094_v48 = vsel %vm1093_vm13, %v1090_v21, %v1092_v46 }
 0x30d   : > { %v810_v28 = vmul.f32 0.5, %v809_v27  ;;  %v1106_v50 = vsel %vm1105_vm14, %v1102_v35, %v1104_v47  ;;  %v1097_v52 = vsel %vm1095_vm15, %v1096_v49, %v1094_v48 }
 0x30e   : > { %v1109_v53 = vsel %vm1107_vm3, %v1108_v51, %v1106_v50  ;;  %v1098_v54 = vmax.f32 %v1097_v52, 1e-08 }
 0x30f   : > { %vm811_vm9 = vcmp.gt.f32.partialorder %v810_v28, 0.5  ;;  %1064 = vst.msk [vmem:[%s2293_s10] sm:$0xff] %vm1063_vm7, %v810_v28  ;;  %v1110_v55 = vmax.f32 %v1109_v53, 1e-08 }
 0x310   : > { %vm813_vm10 = vmor %vm811_vm9, %vm812_vm8 }
 0x311   : > { %v1602_v29 = vsel %vm813_vm10, 1.0, %v2050_v1  ;;  %v814_v30 = vsel %vm813_vm10, 1, %v2054_v2  ;;  %v1111_v56 = vmul.f32 %v1110_v55, %v1098_v54 }
 0x312   : > { %v2300_v31 = vmul.f32 %v1602_v29, %v810_v28  ;;  %v816_v32 = vrot.slane %v814_v30, 7 }
 0x313   : > { %1880 = vrcp.f32 %v1111_v56 }
 0x314   : > { %v829_v33 = vmul.f32 %v2300_v31, %v2246_v9  ;;  %v817_v34 = vsel %vm776_vm2, 0, %v816_v32 }
 0x315   : > { %v818_v36 = vadd.s32 %v817_v34, %v814_v30 }
 0x316   : > { %1728 = vmatpush3.msra.mxu1 %v829_v33 }
 0x317   : > { %v819_v37 = vrot.slane %v818_v36, 6  ;;  %1732 = vmatprep.subr.mxu1 %v2050_v1 }
 0x319   : > { %v821_v38 = vsel %vm820_vm11, 0, %v819_v37 }
 0x31a   : > { %v822_v39 = vadd.s32 %v821_v38, %v818_v36 }
 0x31c   : > { %v823_v40 = vrot.slane %v822_v39, 4 }
 0x31d   : > { %v1881_v57 = vpop.eup %1880 }
 0x31e   : > { %v825_v41 = vsel %vm824_vm12, 0, %v823_v40 }
 0x31f   : > { %v826_v42 = vadd.s32 %v825_v41, %v822_v39 }
 0x321   : > { %v1603_v44 = vadd.s32 4294967295, %v826_v42 }
 0x323   : > { %831 = vperm.xlu0 %1868, %v1603_v44  }
 0x33f   : > { %v1083_v58 = vpop.xlane.xlu1 %1082 }
 0x340   : > { %v1113_v59 = vmul.f32 %v1881_v57, %v1083_v58 }
 0x342   : > { %v1114_v60 = vsub.f32 1.0, %v1113_v59 }
 0x344   : > { %v1115_v61 = vmul.f32 0.5, %v1114_v60 }
 0x346   : > { %vm1116_vm4 = vcmp.gt.f32.partialorder %v1115_v61, 0.5  ;;  %1613 = vst.msk [vmem:[%s2293_s10 + $0x8] sm:$0xff] %vm1063_vm7, %v1115_v61 }
 0x347   : > { %vm1117_vm5 = vmor %vm1116_vm4, %vm812_vm8  ;;  %vm1065_vm8 = vcmask 57344  }
 0x348   : > { %v1118_v62 = vsel %vm1117_vm5, 1, %v2054_v2  ;;  %v1607_v63 = vsel %vm1117_vm5, 1.0, %v2050_v1  ;;  %v769_v2 = vand.u32 127, %v766_v22 }
 0x349   : > { %v1120_v0 = vrot.slane %v1118_v62, 7  ;;  %v1130_v3 = vmul.f32 %v1607_v63, %v1115_v61 }
 0x34b   : > { %v1121_v4 = vsel %vm776_vm2, 0, %v1120_v0  ;;  %v1131_v34 = vmul.f32 %v1130_v3, %v2246_v9 }
 0x34c   : > { %v1122_v5 = vadd.s32 %v1121_v4, %v1118_v62 }
 0x34e   : > { %v1123_v6 = vrot.slane %v1122_v5, 6 }
 0x350   : > { %v1124_v7 = vsel %vm820_vm11, 0, %v1123_v6 }
 0x351   : > { %v1125_v8 = vadd.s32 %v1124_v7, %v1122_v5 }
 0x353   : > { %v1126_v10 = vrot.slane %v1125_v8, 4 }
 0x355   : > { %v1127_v11 = vsel %vm824_vm12, 0, %v1126_v10 }
 0x356   : > { %v1128_v12 = vadd.s32 %v1127_v11, %v1125_v8 }
 0x358   : > { %v1608_v13 = vadd.s32 4294967295, %v1128_v12 }
 0x35a   : > { %1133 = vperm.xlu1 %1869, %v1608_v13  }
 0x3a2   : > { %v832_v14 = vpop.permute.xlu0 %831 }
 0x3a3   : > { %vm833_vm7 = vcmp.eq.s32.totalorder %v832_v14, %v769_v2 }
 0x3a4   : > { %v1604_v15 = vsel %vm833_vm7, 1.0, %v2050_v1 }
 0x3a5   : > { %v1012_v16 = vsel %vm868_vm6, %v1604_v15, 0.0  ;;  %836 = vxpose.xlu1.b32.start.end [1/1] (short) (narrow) %v1604_v15, 8 }
 0x3a6   : > { %v1013_v17 = vrot.slane %v1012_v16, 4 }
 0x3a8   : > { %v1014_v18 = vadd.f32 %v1013_v17, %v1012_v16 }
 0x3aa   : > { %v1015_v19 = vrot.slane %v1014_v18, 2 }
 0x3ac   : > { %v1016_v20 = vadd.f32 %v1015_v19, %v1014_v18 }
 0x3ae   : > { %v1017_v21 = vrot.slane %v1016_v20, 1 }
 0x3b0   : > { %v1018_v23 = vadd.f32 %v1017_v21, %v1016_v20 }
 0x3b2   : > { %1066 = vst.msk [vmem:[%s2320_s13] sm:$0x1] %vm1065_vm8, %v1018_v23 }
 0x3d9   : > { %v1134_v22 = vpop.permute.xlu1 %1133 }
 0x3da   : > { %vm1135_vm9 = vcmp.eq.s32.totalorder %v1134_v22, %v769_v2 }
 0x3db   : > { %v1609_v24 = vsel %vm1135_vm9, 1.0, %v2050_v1 }
 0x3dc   : > { %v1313_v25 = vsel %vm868_vm6, %v1609_v24, 0.0  ;;  %1138 = vxpose.xlu0.b32.start.end [1/1] (short) (narrow) %v1609_v24, 8 }
 0x3dd   : > { %v1314_v26 = vrot.slane %v1313_v25, 4 }
 0x3df   : > { %v1315_v27 = vadd.f32 %v1314_v26, %v1313_v25 }
 0x3e1   : > { %v1316_v28 = vrot.slane %v1315_v27, 2 }
 0x3e3   : > { %v1317_v29 = vadd.f32 %v1316_v28, %v1315_v27 }
 0x3e5   : > { %v1318_v30 = vrot.slane %v1317_v29, 1 }
 0x3e7   : > { %v1319_v32 = vadd.f32 %v1318_v30, %v1317_v29 }
 0x3e9   : > { %1614 = vst.msk [vmem:[%s2320_s13 + $0x1] sm:$0x1] %vm1065_vm8, %v1319_v32 }
 0x425   : > { %v852_v33 = vpop.trf.xlu1 }
 0x426   : > { %1730 = vmatmul.mubr.msk.f32.vlgmr.msra.gmra.mrb[2].mxu1 %vm868_vm6, %v852_v33 }
 0x427   : > { %1733 = vmatpush3.msra.mxu1 %v2300_v31  ;;  %1734 = vmatprep.mubr.msk.f32.mxu1 %vm2049_vm0, %v2050_v1 }
 0x428   : > { %1737 = vmatprep.subr.mxu1 %v2050_v1 }
 0x42a   : > { %1735 = vmatmul.mubr.msk.f32.vlgmr.msra.gmra.mrb[4].mxu1 %vm868_vm6, %v852_v33 }
 0x42b   : > { %1738 = vmatpush3.msra.mxu1 %v1131_v34  ;;  %1739 = vmatprep.mubr.msk.f32.mxu1 %vm2049_vm0, %v2050_v1 }
 0x42c   : > { %1742 = vmatprep.subr.mxu1 %v2050_v1 }
 0x45c   : > { %v1154_v35 = vpop.trf.xlu0 }
 0x45d   : > { %1740 = vmatmul.mubr.msk.f32.vlgmr.msra.gmra.mrb[6].mxu1 %vm868_vm6, %v1154_v35 }
 0x45e   : > { %1743 = vmatpush3.msra.mxu1 %v1130_v3  ;;  %1744 = vmatprep.mubr.msk.f32.mxu1 %vm2049_vm0, %v2050_v1 }
 0x461   : > { %1745 = vmatmul.mubr.msk.f32.vlgmr.msra.gmra.mrb[8].mxu1 %vm868_vm6, %v1154_v35 }
 0x4f9   : > { %v938_v31 = vpop.f32.mrb[2].mxu1 }
 0x4fa   : > { %v1731_v36 = vpop.f32.mrb[3].mxu1  ;;  %v1022_v55 = vrot.slane %v938_v31, 7 }
 0x4fc   : > { %v1024_v56 = vsel %vm776_vm2, 0.0, %v1022_v55 }
 0x4fd   : > { %v1008_v9 = vpop.f32.mrb[4].mxu1 }
 0x4fe   : > { %v1020_v37 = vsub.f32 1.0, %v1008_v9  ;;  %v1736_v38 = vpop.f32.mrb[5].mxu1 }
 0x500   : > { %v1032_v39 = vrot.slane %v1020_v37, 7  ;;  %1027 = vperm.xlu1 %1869, %v1020_v37  }
 0x502   : > { %v1034_v40 = vsel %vm776_vm2, 1.0, %v1032_v39 }
 0x503   : > { %v1035_v41 = vmul.f32 %v1034_v40, %v1020_v37 }
 0x505   : > { %1042 = vperm.xlu0 %1868, %v1035_v41   ;;  %v1047_v42 = vrot.slane %v1035_v41, 6 }
 0x507   : > { %v1049_v43 = vsel %vm820_vm11, 1.0, %v1047_v42 }
 0x508   : > { %v1050_v44 = vmul.f32 %v1049_v43, %v1035_v41 }
 0x50a   : > { %1057 = vperm.xlu1 %1869, %v1050_v44  }
 0x530   : > { %v1239_v45 = vpop.f32.mrb[6].mxu1 }
 0x531   : > { %v1741_v1 = vpop.f32.mrb[7].mxu1  ;;  %v1323_v8 = vrot.slane %v1239_v45, 7 }
 0x533   : > { %v1325_v10 = vsel %vm776_vm2, 0.0, %v1323_v8 }
 0x534   : > { %v1309_v46 = vpop.f32.mrb[8].mxu1 }
 0x535   : > { %v1321_v47 = vsub.f32 1.0, %v1309_v46  ;;  %v1746_v48 = vpop.f32.mrb[9].mxu1 }
 0x537   : > { %v1333_v49 = vrot.slane %v1321_v47, 7  ;;  %1328 = vperm.xlu1 %1869, %v1321_v47  }
 0x539   : > { %v1335_v50 = vsel %vm776_vm2, 1.0, %v1333_v49 }
 0x53a   : > { %v1336_v51 = vmul.f32 %v1335_v50, %v1321_v47 }
 0x53c   : > { %1343 = vperm.xlu1 %1869, %v1336_v51   ;;  %v1348_v52 = vrot.slane %v1336_v51, 6 }
 0x53e   : > { %v1350_v53 = vsel %vm820_vm11, 1.0, %v1348_v52 }
 0x53f   : > { %v1351_v54 = vmul.f32 %v1350_v53, %v1336_v51 }
 0x541   : > { %1358 = vperm.xlu1 %1869, %v1351_v54  }
 0x57f   : > { %v1028_v57 = vpop.permute.xlu1 %1027 }
 0x580   : > { %v1030_v58 = vmul.f32 %v1028_v57, %v1024_v56 }
 0x582   : > { %v1031_v59 = vadd.f32 %v1030_v58, %v938_v31 }
 0x584   : > { %v1037_v60 = vrot.slane %v1031_v59, 6  ;;  %v1043_v62 = vpop.permute.xlu0 %1042 }
 0x586   : > { %v1039_v61 = vsel %vm820_vm11, 0.0, %v1037_v60 }
 0x587   : > { %v1045_v63 = vmul.f32 %v1043_v62, %v1039_v61 }
 0x589   : > { %v1046_v0 = vadd.f32 %v1045_v63, %v1031_v59  ;;  %v1058_v5 = vpop.permute.xlu1 %1057 }
 0x58b   : > { %v1052_v3 = vrot.slane %v1046_v0, 4 }
 0x58d   : > { %v1054_v4 = vsel %vm824_vm12, 0.0, %v1052_v3 }
 0x58e   : > { %v1060_v6 = vmul.f32 %v1058_v5, %v1054_v4 }
 0x590   : > { %v1061_v7 = vadd.f32 %v1060_v6, %v1046_v0 }
 0x592   : > { %1062 = vst.msk [vmem:[%s258_s28] sm:$0xff] %vm277_vm1, %v1061_v7 }
 0x5b6   : > { %v1329_v11 = vpop.permute.xlu1 %1328 }
 0x5b7   : > { %v1331_v12 = vmul.f32 %v1329_v11, %v1325_v10 }
 0x5b9   : > { %v1332_v13 = vadd.f32 %v1331_v12, %v1239_v45 }
 0x5bb   : > { %v1338_v2 = vrot.slane %v1332_v13, 6  ;;  %v1344_v15 = vpop.permute.xlu1 %1343 }
 0x5bd   : > { %v1340_v14 = vsel %vm820_vm11, 0.0, %v1338_v2 }
 0x5be   : > { %v1346_v16 = vmul.f32 %v1344_v15, %v1340_v14 }
 0x5c0   : > { %v1347_v17 = vadd.f32 %v1346_v16, %v1332_v13  ;;  %v1359_v20 = vpop.permute.xlu1 %1358 }
 0x5c2   : > { %v1353_v18 = vrot.slane %v1347_v17, 4 }
 0x5c4   : > { %v1355_v19 = vsel %vm824_vm12, 0.0, %v1353_v18 }
 0x5c5   : > { %v1361_v21 = vmul.f32 %v1359_v20, %v1355_v19 }
 0x5c7   : > { %v1362_v23 = vadd.f32 %v1361_v21, %v1347_v17 }
 0x5c9   : > { %1612 = vst.msk [vmem:[%s258_s28 + $0x8] sm:$0xff] %vm277_vm1, %v1362_v23 }
 0x5ca   : > { %1953 = shalt.err (!%p1950_p7)
}
 0x5cb   : > { %s1954_s29 = scalar_lea.hbm %s2359_s14, 256  ;;  %s1958_s27 = scalar_lea.hbm %s2449_s3, 512 }
 0x5cc   : > { %p1955_p9 = scmp.ne.s32.totalorder %s2359_s14, %s1954_s29  ;;  %p1959_p0 = scmp.lt.u32.totalorder %s2359_s14, %s2449_s3 }
 0x5cd   : > { %p1960_p1 = scmp.lt.u32.totalorder %s1958_s27, %s1954_s29  ;;  %p1962_p4 = scmp.lt.u32.totalorder %s1954_s29, %s2359_s14 }
 0x5ce   : > { %p1956_p2 = pnand %p1955_p9, %p2183_p12 }
 0x5cf   : > { %p1961_p11 = por %p1960_p1, %p1959_p0 }
 0x5d0   : > { %p1957_p5 = pneg %p1956_p2 }
 0x5d1   : > { %p1963_p6 = por %p1962_p4, %p1961_p11 }
 0x5d3   : > { %p1964_p8 = pnand %p1963_p6, %p1957_p5 }
 0x5d5   : > { %1967 = shalt.err (!%p1964_p8)
}
 0x5d6   : > { %s2056_s7 = smov 128   ;;  %s2057_s11 = smov 256   ;;  %v1432_v22 = vld [vmem:[%s2293_s10] sm:$0xff] (%p2183_p12)  ;;  %v1434_v24 = vld [vmem:[%s2293_s10 + $0x8] sm:$0xff] (%p2183_p12) }
 0x5d7   : > { %s2058_s12 = smov 8   ;;  %s1379_s28 = scalar_lea.sflag [#allocation10], %s2228_s16 }
 0x5d8   : > { %1798 = dma.vmem_to_hbm [thread:$0]  (%p2183_p12), %s2354_s17, 256, %s2359_s14, %s1370_s6, %s2056_s7, %s2057_s11, %s2058_s12  }
 0x5d9   : > { %1400 = sbr.rel (!%p2183_p12) target bundleno = 1504 (0x5e0), region = 48  ;;  %s1619_s29 = sshll.u32 (%p2183_p12), %s2113_s22, 3 }
 0x5da   : > { %s1402_s24 = scalar_lea.vmem (%p2183_p12), %s2450_s4, %s1619_s29 }
 0x5db   : > { %1433 = vst [vmem:[%s1402_s24] sm:$0xff] (%p2183_p12), %v1432_v22  ;;  %1435 = vst [vmem:[%s1402_s24 + $0x10] sm:$0xff] (%p2183_p12), %v1434_v24 }
 0x5e0 PF: > { %s1620_s17 = sshll.u32 %s2113_s22, 4  ;;  %s1447_s14 = sshll.u32 %s2320_s13, 4  ;;  %s2402_s14 = int_to_ptr.vmem [resolvable:$true] %s1447_s14 }
 0x5e1   : > { %s2400_s7 = scalar_lea.hbm %s2451_s5, %s1620_s17  ;;  %s1968_s10 = scalar_lea.vmem %s2402_s14, 32 }
 0x5e2   : > { %p1969_p10 = scmp.ne.s32.totalorder %s2402_s14, %s1968_s10  ;;  %s2059_s11 = smov [#allocation9]  }
 0x5e3   : > { %s1972_s12 = sshll.u32 %s2059_s11, 4  ;;  %s1973_s12 = int_to_ptr.vmem [resolvable:$false] %s1972_s12 }
 0x5e4   : > { %p1970_p13 = pnand %p1969_p10, %p2183_p12  ;;  %s1974_s22 = scalar_lea.vmem %s1973_s12, 64 }
 0x5e5   : > { %p1975_p7 = scmp.lt.s32.totalorder %s2402_s14, %s1973_s12  ;;  %p1976_p9 = scmp.lt.s32.totalorder %s1974_s22, %s1968_s10 }
 0x5e6   : > { %p1971_p3 = pneg %p1970_p13 }
 0x5e7   : > { %p1977_p2 = por %p1976_p9, %p1975_p7 }
 0x5e9   : > { %p1978_p5 = pnand %p1977_p2, %p1971_p3 }
 0x5eb   : > { %1981 = shalt.err (!%p1978_p5)
}
 0x5ec   : > { %s1982_s13 = scalar_lea.hbm %s2400_s7, 32  ;;  %s1986_s27 = scalar_lea.hbm %s2451_s5, 64 }
 0x5ed   : > { %p1983_p0 = scmp.ne.s32.totalorder %s2400_s7, %s1982_s13  ;;  %p1987_p4 = scmp.lt.u32.totalorder %s2400_s7, %s2451_s5 }
 0x5ee   : > { %p1988_p6 = scmp.lt.u32.totalorder %s1986_s27, %s1982_s13  ;;  %p1990_p10 = scmp.lt.u32.totalorder %s1982_s13, %s2400_s7 }
 0x5ef   : > { %p1984_p1 = pnand %p1983_p0, %p2183_p12 }
 0x5f0   : > { %p1989_p8 = por %p1988_p6, %p1987_p4 }
 0x5f1   : > { %p1985_p11 = pneg %p1984_p1 }
 0x5f2   : > { %p1991_p13 = por %p1990_p10, %p1989_p8 }
 0x5f4   : > { %p1992_p3 = pnand %p1991_p13, %p1985_p11 }
 0x5f6   : > { %1995 = shalt.err (!%p1992_p3)
}
 0x5f7   : > { %s2060_s6 = smov 16   ;;  %s2061_s15 = smov 1  }
 0x5f8   : > { %1799 = dma.vmem_to_hbm [thread:$0]  (%p2183_p12), %s2402_s14, 32, %s2400_s7, %s1379_s28, %s2060_s6, %s2052_s26, %s2061_s15  }
 0x5f9 PF: > { %s1462_s10 = sand.u32 1, %s2030_s18   ;;  %p2466_p7 = scmp.ne.s32.totalorder %s2456_s25, 0 }
 0x5fa   : > { %p2467_p9 = scmp.ge.s32.totalorder %s2042_s21, 2  ;;  %s1463_s11 = scalar_lea.sflag [#allocation4], %s1462_s10 }
 0x5fc   : > { %p1811_p2 = pnand %p2467_p9, %p2466_p7 }
 0x5fe   : > { %2021 = dma.done.wait (!%p1811_p2), %s1463_s11, 256  }
 0x5ff   : > { %2023 = vsyncadd (!%p1811_p2), %s1463_s11, 4294967040  ;;  %s1479_s12 = scalar_lea.sflag [#allocation10], %s1462_s10 }
 0x600   : > { %2025 = dma.done.wait (!%p1811_p2), %s1479_s12, 32  }
 0x601   : > { %2027 = vsyncadd (!%p1811_p2), %s1479_s12, 4294967264  ;;  %p23_p12 = scmp.ge.s32.totalorder %s2148_s30, 4   ;;  %s2468_s18 = smov %s2034_s19 }
 0x602   : > { %s2469_s19 = smov %s2038_s20  ;;  %s2470_s20 = smov %s2179_s8 }
 0x603   : > { %s2471_s21 = smov %s2148_s30  ;;  %25 = sbr.rel (!%p23_p12) target bundleno = 8 (0x8), region = 151 }
 0x60a   :  { %1484 = vsyncpa [#allocation3], 1 }
 0x60b   :  { %1486 = vsyncpa [#allocation3 + $0x1], 1 }
 0x60c   :  { %1487 = vsyncpa [#allocation6], 1 }
 0x60d   :  { %1488 = vsyncpa [#allocation4], 1 }
 0x60e   :  { %1490 = vsyncpa [#allocation4 + $0x1], 1 }
 0x60f   :  { %1491 = vsyncpa [#allocation10], 1 }
 0x610   :  { %1493 = vsyncpa [#allocation10 + $0x1], 1 }

</bundles_post_ra>
